<compile_context>
chip_gen: v5e
topology: v5e:2x2
jax: 0.10.0
libtpu: 0.0.40
codegen_flags: <defaults>
</compile_context>

<pallas_src>
from typing import NamedTuple

import jax
import jax.numpy as jnp
from jax.experimental import pallas as pl
from jax.experimental.pallas import tpu as pltpu

_LANE = 128        # lane width: last-dim alignment target
_SUBLANE = 8       # sublane width: second-to-last-dim alignment target
_CHUNK_D = 2048    # default reduction-chunk size (multiple of 128)


def _round_up(a: int, b: int) -> int:
    return (a + b - 1) // b * b


def _cdiv(a: int, b: int) -> int:
    return (a + b - 1) // b


# --------------------------------------------------------------------------
# Kernels
# --------------------------------------------------------------------------
def _proto_kernel_fused(x_ref, x2_ref, pt_ref, p2_ref, o_ref):
    """Single-pass tile: whole D in one chunk (the real ProtoClassifier case).

    x_ref : [tm, Dp]  batch tile (matmul dtype)
    x2_ref: [tm, 1]   precomputed ||x||^2 (f32)
    pt_ref: [Dp, tn]  prototypes, pre-transposed and pre-scaled by -2
    p2_ref: [1,  tn]  precomputed ||p||^2 (f32)
    o_ref : [tm, tn]  output tile, -distance (f32)
    """
    cross = jnp.dot(x_ref[...], pt_ref[...], preferred_element_type=jnp.float32)
    sq = x2_ref[...] + p2_ref[...] + cross
    o_ref[...] = -jnp.sqrt(jnp.maximum(sq, 0.0))


def _proto_kernel_tiled(x_ref, x2_ref, pt_ref, p2_ref, o_ref):
    """Large-D path: accumulate -2<x,p> over D chunks directly into o_ref.

    o_ref is resident across the k axis (index_map (i, j)); no scratch needed.
    """
    k = pl.program_id(2)
    nk = pl.num_programs(2)

    cross = jnp.dot(x_ref[...], pt_ref[...], preferred_element_type=jnp.float32)

    @pl.when(k == 0)
    def _init():
        o_ref[...] = x2_ref[...] + p2_ref[...] + cross

    @pl.when(k > 0)
    def _accum():
        o_ref[...] += cross

    @pl.when(k == nk - 1)
    def _finalize():
        o_ref[...] = -jnp.sqrt(jnp.maximum(o_ref[...], 0.0))


# --------------------------------------------------------------------------
# One-time parameter preparation (hoisted out of the forward hot path)
# --------------------------------------------------------------------------
class PreparedPrototypes(NamedTuple):
    pt_neg2: jax.Array   # [Dp, Cp] matmul dtype: zero-padded (-2 * prototypes).T
    p2: jax.Array        # [1, Cp]  f32: ||p||^2 (zeros in the padded columns)
    num_classes: int
    feature_dim: int
    d_chunk: int


def prepare_prototypes(prototypes, *, matmul_dtype=jnp.bfloat16,
                       d_chunk=_CHUNK_D) -> PreparedPrototypes:
    """Do all prototype-side work once (prototypes are parameters)."""
    assert d_chunk % _LANE == 0 and d_chunk >= _LANE
    C, D = prototypes.shape
    Cp = _round_up(C, _LANE)
    if D > d_chunk:
        Dp = _round_up(D, d_chunk)       # multi-chunk reduction
    elif D % _LANE:
        Dp = _round_up(D, _LANE)         # single chunk, lane-align the MXU K dim
    else:
        Dp = D                           # already aligned: no padding at all

    p = prototypes.astype(jnp.float32)
    # Squared norms from the original f32 prototypes (accuracy), lane-aligned row.
    p2 = jnp.zeros((1, Cp), jnp.float32).at[0, :C].set(jnp.sum(p * p, axis=1))
    # -2 folded in here (exact), transposed to [D, C] so the MXU consumes it
    # directly, zero-padded, stored in the streaming dtype (bf16 by default).
    pt_neg2 = jnp.zeros((Dp, Cp), matmul_dtype).at[:D, :C].set(
        (-2.0 * p).T.astype(matmul_dtype))
    return PreparedPrototypes(pt_neg2, p2, C, D, d_chunk)


# --------------------------------------------------------------------------
# Forward
# --------------------------------------------------------------------------
def proto_classifier_forward(x, prepped: PreparedPrototypes, *,
                             tm_max=512, tn_max=512):
    """x: [B, D] -> [B, C] float32  (== -torch.cdist(x, prototypes))."""
    B, D = x.shape
    assert D == prepped.feature_dim, "feature dims must match"
    C = prepped.num_classes
    Dp, Cp = prepped.pt_neg2.shape

    # Per-call x-side work only: norms in f32, matmul operand in streaming dtype.
    xf = x.astype(jnp.float32)
    x2 = jnp.sum(xf * xf, axis=1, keepdims=True)            # [B, 1] f32
    x_mm = x.astype(prepped.pt_neg2.dtype)
    if Dp != D:
        # Only the D tail needs zero fill (reduction axis); B/C are never padded.
        x_mm = jnp.pad(x_mm, ((0, 0), (0, Dp - D)))

    # Tile selection.
    tn = min(_round_up(tn_max, _LANE), Cp)
    tk = min(prepped.d_chunk, Dp)
    tm_max = _round_up(tm_max, _SUBLANE)
    tm = B if B <= tm_max else tm_max
    nb = _cdiv(B, tm)
    nc = _cdiv(Cp, tn)
    nk = Dp // tk
    # Keep >= 2 output tiles when the batch allows, so both v7x TensorCores
    # (sharded over the 'parallel' axes) have work.
    if nb * nc == 1 and B >= 2 * _SUBLANE:
        tm = _round_up(_cdiv(B, 2), _SUBLANE)
        nb = _cdiv(B, tm)

    out_shape = jax.ShapeDtypeStruct((B, Cp), jnp.float32)
    compiler_params_2d = pltpu.CompilerParams(
        dimension_semantics=("parallel", "parallel"),
        vmem_limit_bytes=48 * 1024 * 1024)
    compiler_params_3d = pltpu.CompilerParams(
        dimension_semantics=("parallel", "parallel", "arbitrary"),
        vmem_limit_bytes=48 * 1024 * 1024)

    if nk == 1:
        # Fast path (the actual ProtoClassifier regime: C, D fit one tile):
        # no reduction axis, no accumulator, no pl.when.
        out = pl.pallas_call(
            _proto_kernel_fused,
            out_shape=out_shape,
            grid_spec=pltpu.PrefetchScalarGridSpec(
                num_scalar_prefetch=0,
                grid=(nb, nc),
                in_specs=[
                    pl.BlockSpec((tm, tk), lambda i, j: (i, 0)),   # x tile
                    pl.BlockSpec((tm, 1), lambda i, j: (i, 0)),    # ||x||^2
                    pl.BlockSpec((tk, tn), lambda i, j: (0, j)),   # -2 p^T tile
                    pl.BlockSpec((1, tn), lambda i, j: (0, j)),    # ||p||^2
                ],
                out_specs=pl.BlockSpec((tm, tn), lambda i, j: (i, j)),
            ),
            compiler_params=compiler_params_2d,
        )(x_mm, x2, prepped.pt_neg2, prepped.p2)
    else:
        # Large-D path: reduction axis last, accumulate into the resident output.
        out = pl.pallas_call(
            _proto_kernel_tiled,
            out_shape=out_shape,
            grid_spec=pltpu.PrefetchScalarGridSpec(
                num_scalar_prefetch=0,
                grid=(nb, nc, nk),
                in_specs=[
                    pl.BlockSpec((tm, tk), lambda i, j, k: (i, k)),
                    pl.BlockSpec((tm, 1), lambda i, j, k: (i, 0)),
                    pl.BlockSpec((tk, tn), lambda i, j, k: (k, j)),
                    pl.BlockSpec((1, tn), lambda i, j, k: (0, j)),
                ],
                out_specs=pl.BlockSpec((tm, tn), lambda i, j, k: (i, j)),
            ),
            compiler_params=compiler_params_3d,
        )(x_mm, x2, prepped.pt_neg2, prepped.p2)

    # Padded C columns (and nothing else) are sliced off; B was never padded.
    return out[:, :C]


if __name__ == "__main__":
    # Small shapes consistent with the module: batch=8, feature_dim=32, classes=10.
    B, D, C = 8, 32, 10
    key = jax.random.PRNGKey(0)
    kx, kp = jax.random.split(key)
    x = jax.random.normal(kx, (B, D), dtype=jnp.float32)
    # Stand-in for nn.Parameter(torch.randn(num_classes, feature_dim)).
    prototypes = jax.random.normal(kp, (C, D), dtype=jnp.float32)

    # Pure-JAX reference (direct pairwise Euclidean distance, like torch.cdist).
    ref = -jnp.sqrt(jnp.sum((x[:, None, :] - prototypes[None, :, :]) ** 2, axis=-1))

    # 1) f32 MXU operand path: tight tolerance (fast fused kernel).
    prep_f32 = prepare_prototypes(prototypes, matmul_dtype=jnp.float32)
    out_f32 = jax.block_until_ready(proto_classifier_forward(x, prep_f32))
    assert out_f32.shape == (B, C)
    assert jnp.allclose(out_f32, ref, atol=1e-4, rtol=1e-4), "f32 mismatch vs reference"

    # 2) Default production path: bf16 streamed operands, f32 accumulation/epilogue.
    prep_bf16 = prepare_prototypes(prototypes)          # bf16 by default
    out_bf16 = jax.block_until_ready(proto_classifier_forward(x, prep_bf16))
    assert out_bf16.shape == (B, C)
    assert jnp.allclose(out_bf16, ref, atol=5e-2, rtol=5e-2), "bf16 mismatch vs reference"

    # 3) Exercise the multi-chunk reduction kernel (tiny d_chunk forces nk>1, nc>1).
    B2, D2, C2 = 24, 256, 300
    kx2, kp2 = jax.random.split(jax.random.PRNGKey(1))
    x_big = jax.random.normal(kx2, (B2, D2), dtype=jnp.float32)
    protos_big = jax.random.normal(kp2, (C2, D2), dtype=jnp.float32)
    ref_big = -jnp.sqrt(jnp.sum((x_big[:, None, :] - protos_big[None, :, :]) ** 2,
                                axis=-1))
    prep_big = prepare_prototypes(protos_big, matmul_dtype=jnp.float32, d_chunk=128)
    out_big = jax.block_until_ready(
        proto_classifier_forward(x_big, prep_big, tn_max=128))
    assert out_big.shape == (B2, C2)
    assert jnp.allclose(out_big, ref_big, atol=1e-3, rtol=1e-3), "tiled-path mismatch"

    print("KERNEL_OK")
</pallas_src>

<mosaic_0001>
module attributes {stable_mosaic.version = 11 : i64} {
  func.func @_proto_kernel_fused(%arg0: i32, %arg1: i32, %arg2: memref<8x128xf32, #tpu.memory_space<vmem>>, %arg3: memref<8x1xf32, #tpu.memory_space<vmem>>, %arg4: memref<128x128xf32, #tpu.memory_space<vmem>>, %arg5: memref<1x128xf32, #tpu.memory_space<vmem>>, %arg6: memref<8x128xf32, #tpu.memory_space<vmem>>) attributes {dimension_semantics = [#tpu.dimension_semantics<parallel>, #tpu.dimension_semantics<parallel>], iteration_bounds = array<i64: 1, 1>, scalar_prefetch = 0 : i64, scratch_operands = 0 : i64, tpu.core_type = #tpu.core_type<tc>, window_params = [{transform_indices = @transform_0, window_bounds = array<i64: 8, 128>}, {transform_indices = @transform_1, window_bounds = array<i64: 8, 1>}, {transform_indices = @transform_2, window_bounds = array<i64: 128, 128>}, {transform_indices = @transform_3, window_bounds = array<i64: 1, 128>}, {transform_indices = @transform_4, window_bounds = array<i64: 8, 128>}]} {
    %c0 = arith.constant 0 : index
    %c0_0 = arith.constant 0 : index
    %0 = vector.load %arg2[%c0, %c0_0] : memref<8x128xf32, #tpu.memory_space<vmem>>, vector<8x128xf32>
    %c0_1 = arith.constant 0 : index
    %c0_2 = arith.constant 0 : index
    %1 = vector.load %arg4[%c0_1, %c0_2] : memref<128x128xf32, #tpu.memory_space<vmem>>, vector<128x128xf32>
    %cst = arith.constant dense<0.000000e+00> : vector<8x128xf32>
    %2 = tpu.matmul %0, %1, %cst {dimension_numbers = #tpu.dot_dimension_numbers<[1], [0], [0], [1], [0, 0, 1, 1], [], []>} : vector<8x128xf32>, vector<128x128xf32>, vector<8x128xf32> -> vector<8x128xf32>
    %c0_3 = arith.constant 0 : index
    %c0_4 = arith.constant 0 : index
    %3 = vector.load %arg3[%c0_3, %c0_4] : memref<8x1xf32, #tpu.memory_space<vmem>>, vector<8x1xf32>
    %c0_5 = arith.constant 0 : index
    %c0_6 = arith.constant 0 : index
    %4 = vector.load %arg5[%c0_5, %c0_6] : memref<1x128xf32, #tpu.memory_space<vmem>>, vector<1x128xf32>
    %5 = vector.broadcast %3 : vector<8x1xf32> to vector<8x128xf32>
    %6 = vector.broadcast %4 : vector<1x128xf32> to vector<8x128xf32>
    %7 = arith.addf %5, %6 : vector<8x128xf32>
    %8 = arith.addf %7, %2 : vector<8x128xf32>
    %cst_7 = arith.constant 0.000000e+00 : f32
    %9 = vector.broadcast %cst_7 : f32 to vector<8x128xf32>
    %10 = arith.maximumf %8, %9 : vector<8x128xf32>
    %11 = math.sqrt %10 : vector<8x128xf32>
    %cst_8 = arith.constant 0.000000e+00 : f32
    %12 = vector.broadcast %cst_8 : f32 to vector<8x128xf32>
    %13 = arith.subf %12, %11 : vector<8x128xf32>
    %c0_9 = arith.constant 0 : index
    %c0_10 = arith.constant 0 : index
    %14 = vector.load %arg6[%c0_9, %c0_10] : memref<8x128xf32, #tpu.memory_space<vmem>>, vector<8x128xf32>
    tpu.vector_store %arg6[%c0_9, %c0_10], %13 {strides = array<i32>} : memref<8x128xf32, #tpu.memory_space<vmem>>, vector<8x128xf32>,
    return
  }
  func.func @transform_0(%arg0: i32, %arg1: i32) -> (i32, i32) {
    %c0_i32 = arith.constant 0 : i32
    %c0_i32_0 = arith.constant 0 : i32
    return %arg0, %c0_i32 : i32, i32
  }
  func.func @transform_1(%arg0: i32, %arg1: i32) -> (i32, i32) {
    %c0_i32 = arith.constant 0 : i32
    %c0_i32_0 = arith.constant 0 : i32
    return %arg0, %c0_i32 : i32, i32
  }
  func.func @transform_2(%arg0: i32, %arg1: i32) -> (i32, i32) {
    %c0_i32 = arith.constant 0 : i32
    %c0_i32_0 = arith.constant 0 : i32
    return %c0_i32, %arg1 : i32, i32
  }
  func.func @transform_3(%arg0: i32, %arg1: i32) -> (i32, i32) {
    %c0_i32 = arith.constant 0 : i32
    %c0_i32_0 = arith.constant 0 : i32
    return %c0_i32, %arg1 : i32, i32
  }
  func.func @transform_4(%arg0: i32, %arg1: i32) -> (i32, i32) {
    %c0_i32 = arith.constant 0 : i32
    return %arg0, %arg1 : i32, i32
  }
}

</mosaic_0001>

<bundles_post_ra>
// kernel: tpu_custom_call.1
= control target key start
LH: loop header
LB: loop body
LE: loop exit
PB: predicated region body
PF: predicated region fallthrough
CT: control target
= control target key end

     0   :  { %9 = vsyncpa [#allocation3], 0  ;;  %s221_s0 = inlined_call_operand.vmem [shape: f32[8,128], index: 0, kind: input, shape index: {}]   ;;  %s222_s1 = inlined_call_operand.vmem [shape: f32[8,1], index: 1, kind: input, shape index: {}]   ;;  %s223_s2 = inlined_call_operand.hbm [shape: f32[128,128], index: 2, kind: input, shape index: {}]   ;;  %s224_s3 = inlined_call_operand.vmem [shape: f32[1,128], index: 3, kind: input, shape index: {}]   ;;  %s225_s4 = inlined_call_operand.hbm [shape: f32[8,128], index: 4, kind: output, shape index: {}]  }
   0x1   :  { %10 = vsyncpa [#allocation4], 0  ;;  %s19_s17 = sshll.u32 %s223_s2, 4  ;;  %s176_s18 = smov [#allocation2]   ;;  %s20_s17 = int_to_ptr.hbm [resolvable:$true] %s19_s17 }
   0x2   :  { %s21_s19 = sshll.u32 %s176_s18, 4  ;;  %s177_s20 = smov 128   ;;  %s22_s19 = int_to_ptr.vmem [resolvable:$true] %s21_s19 }
   0x3   :  { %s178_s21 = smov 8  }
   0x4   :  { %27 = dma.hbm_to_vmem [thread:$0]  %s20_s17, 2048, %s22_s19, [#allocation3], %s177_s20, %s177_s20, %s178_s21  }
   0x5   :  { %172 = dma.done.wait [#allocation3], 2048  }
   0x6   :  { %173 = vsyncadd [#allocation3], 4294965248  ;;  %v50_v0 = vld [vmem:[#allocation2 + $0x78] sm:$0xff]  ;;  %v49_v1 = vld [vmem:[#allocation2 + $0x70] sm:$0xff]  ;;  %v179_v2 = vmov 0  }
   0x7   :  { %51 = vmatpush.msra.mxu0 %v50_v0  ;;  %120 = vset.pattern.permute.xlu0 %v179_v2  ;;  %v48_v3 = vld [vmem:[#allocation2 + $0x68] sm:$0xff]  ;;  %v47_v4 = vld [vmem:[#allocation2 + $0x60] sm:$0xff]  ;;  %v46_v6 = vld [vmem:[#allocation2 + $0x58] sm:$0xff] }
   0x8   :  { %v71_v5 = vld [vmem:[%s222_s1] sm:$0xff]  ;;  %v45_v7 = vld [vmem:[#allocation2 + $0x50] sm:$0xff]  ;;  %v44_v8 = vld [vmem:[#allocation2 + $0x48] sm:$0xff] }
   0x9   :  { %52 = vmatpush.msra.mxu0 %v49_v1  ;;  %75 = vperm.xlu0 %120, %v71_v5   ;;  %v43_v9 = vld [vmem:[#allocation2 + $0x40] sm:$0xff]  ;;  %v42_v10 = vld [vmem:[#allocation2 + $0x38] sm:$0xff]  ;;  %v41_v11 = vld [vmem:[#allocation2 + $0x30] sm:$0xff] }
   0xa   :  { %v40_v12 = vld [vmem:[#allocation2 + $0x28] sm:$0xff]  ;;  %v39_v13 = vld [vmem:[#allocation2 + $0x20] sm:$0xff]  ;;  %v38_v14 = vld [vmem:[#allocation2 + $0x18] sm:$0xff] }
   0xb   :  { %53 = vmatpush.msra.mxu0 %v48_v3  ;;  %v37_v15 = vld [vmem:[#allocation2 + $0x10] sm:$0xff]  ;;  %v36_v16 = vld [vmem:[#allocation2 + $0x8] sm:$0xff]  ;;  %v35_v17 = vld [vmem:[#allocation2] sm:$0xff] }
   0xc   :  { %v34_v18 = vld [vmem:[%s221_s0] sm:$0xff]  ;;  %s180_s0 = smov [#allocation5]  }
   0xd   :  { %54 = vmatpush.msra.mxu0 %v47_v4  ;;  %v121_v19 = vld [vmem:[%s224_s3] ss:$0 sm:$0xff]  ;;  %s103_s26 = sshll.u32 %s180_s0, 4  ;;  %s105_s3 = sshll.u32 %s225_s4, 4  ;;  %s104_s26 = int_to_ptr.vmem [resolvable:$true] %s103_s26  ;;  %s106_s3 = int_to_ptr.hbm [resolvable:$true] %s105_s3 }
   0xf   :  { %55 = vmatpush.msra.mxu0 %v46_v6 }
  0x11   :  { %56 = vmatpush.msra.mxu0 %v45_v7 }
  0x13   :  { %57 = vmatpush.msra.mxu0 %v44_v8 }
  0x15   :  { %58 = vmatpush.msra.mxu0 %v43_v9 }
  0x17   :  { %59 = vmatpush.msra.mxu0 %v42_v10 }
  0x19   :  { %60 = vmatpush.msra.mxu0 %v41_v11 }
  0x1b   :  { %61 = vmatpush.msra.mxu0 %v40_v12 }
  0x1d   :  { %62 = vmatpush.msra.mxu0 %v39_v13 }
  0x1f   :  { %63 = vmatpush.msra.mxu0 %v38_v14 }
  0x21   :  { %64 = vmatpush.msra.mxu0 %v37_v15 }
  0x23   :  { %65 = vmatpush.msra.mxu0 %v36_v16 }
  0x25   :  { %66 = vmatpush.msra.mxu0 %v35_v17 }
  0x26   :  { %67 = vmatmul.f32.vlgmr.msra.gmra.mxu0 %v34_v18 }
  0x7b   :  { %v76_v20 = vpop.permute.xlu0 %75 }
  0x7c   :  { %v81_v21 = vadd.f32 %v121_v19, %v76_v20 }
  0xa3   :  { %v68_v22 = vpop.f32.mrf.mxu0 }
  0xa4   :  { %v82_v23 = vadd.f32 %v81_v21, %v68_v22 }
  0xa6   :  { %v83_v24 = vmax.f32 %v82_v23, 0.0 }
  0xa8   :  { %122 = vrsqrt.f32 %v83_v24  ;;  %vm91_vm0 = vcmp.eq.f32.partialorder %v83_v24, inf  ;;  %v94_v32 = vand.u32 2147483648, %v83_v24  ;;  %vm93_vm1 = vcmp.eq.f32.partialorder %v83_v24, 0.0 }
  0xae   :  { %v123_v25 = vpop.eup %122 }
  0xaf   :  { %v85_v26 = vmul.f32 %v123_v25, %v83_v24 }
  0xb1   :  { %v86_v27 = vmul.f32 %v123_v25, %v85_v26 }
  0xb3   :  { %v87_v28 = vmul.f32 0.5, %v86_v27 }
  0xb5   :  { %v88_v29 = vsub.f32 1.5, %v87_v28 }
  0xb7   :  { %v89_v30 = vmul.f32 %v123_v25, %v88_v29 }
  0xb9   :  { %v90_v31 = vmul.f32 %v89_v30, %v83_v24 }
  0xbb   :  { %v92_v33 = vsel %vm91_vm0, %v83_v24, %v90_v31 }
  0xbc   :  { %v95_v34 = vsel %vm93_vm1, %v94_v32, %v92_v33 }
  0xbd   :  { %v96_v35 = vsub.f32 0.0, %v95_v34 }
  0xbf   :  { %97 = vst [vmem:[#allocation5] sm:$0xff] %v96_v35 }
  0xc0   :  { %108 = dma.vmem_to_hbm [thread:$0]  %s104_s26, 128, %s106_s3, [#allocation4]  }
  0xc1   :  { %174 = dma.done.wait [#allocation4], 128  }
  0xc2   :  { %175 = vsyncadd [#allocation4], 4294967168 }
  0xc3   :  { %113 = vsyncpa [#allocation3], 1 }
  0xc4   :  { %114 = vsyncpa [#allocation4], 1 }

</bundles_post_ra>
